<compile_context>
chip_gen: v7x
topology: tpu7x:2x2x1
jax: 0.10.0
libtpu: 0.0.40
codegen_flags: <defaults>
</compile_context>

<pallas_src>
import jax
import jax.numpy as jnp
from jax.experimental import pallas as pl
from jax.experimental.pallas import tpu as pltpu


def _get_pos_encode(max_seq_len: int, d_model: int) -> jnp.ndarray:
    """Deterministic sinusoidal positional encoding, identical to the PyTorch init."""
    pos = jnp.arange(max_seq_len, dtype=jnp.float32)[:, None]             # (L, 1)
    i = jnp.arange(d_model, dtype=jnp.float32)[None, :]                   # (1, D)
    angle = pos / jnp.power(10000.0, 2.0 * jnp.floor(i / 2.0) / d_model)  # (L, D)
    even_mask = (jnp.arange(d_model) % 2) == 0
    pe = jnp.where(even_mask[None, :], jnp.sin(angle), jnp.cos(angle))
    return pe.astype(jnp.float32)


def _pos_encode_kernel(x_ref, pe_ref, o_ref):
    # x_ref: (TB, TC); pe_ref: (1, TC) broadcast over sublane rows; o_ref: (TB, TC)
    o_ref[...] = (x_ref[...] + pe_ref[...]).astype(o_ref.dtype)


_TARGET_BLOCK_BYTES = 2 << 20   # ~2 MiB: knee of the tiled-add roofline; safe on v7x's 64 MiB VMEM
_MIN_PARALLEL_BLOCKS = 4        # >=2 blocks per TC on v7x megacore; harmless on v5e/v6e
_LANE = 128


def _cdiv(a: int, b: int) -> int:
    return (a + b - 1) // b


def _sublane_multiple(*dtypes) -> int:
    # Min sublane tile: 8 for 4-byte dtypes, 16 for 2-byte (bf16), 32 for 1-byte.
    m = 8
    for dt in dtypes:
        m = max(m, 32 // max(1, jnp.dtype(dt).itemsize))
    return m


def _pick_tiles(b: int, sd: int, itemsize: int, sub: int):
    # Row (sublane/batch) tile: grow toward the block-byte target when SD is
    # small, instead of hard-capping at 8 (fixes large-B / small-SD shapes).
    if b <= sub:
        tb = b
    else:
        rows = (_TARGET_BLOCK_BYTES // max(1, sd * itemsize)) // sub * sub
        tb = min(b, max(sub, rows))
    # Column (lane) tile over flattened S*D: full extent if small, else a
    # 128-multiple sized to the target block bytes given tb.
    if sd <= _LANE:
        tc = sd
    else:
        cols = (_TARGET_BLOCK_BYTES // max(1, tb * itemsize)) // _LANE * _LANE
        tc = min(sd, max(_LANE, cols))

    # v7x: make sure the parallel grid has enough blocks to feed 2 TensorCores
    # once the tensor is big enough to be worth splitting.
    if b * sd * itemsize >= (1 << 20):
        while _cdiv(b, tb) * _cdiv(sd, tc) < _MIN_PARALLEL_BLOCKS:
            if tc >= 2 * _LANE:
                tc = (tc // 2) // _LANE * _LANE
            elif tb >= 2 * sub:
                tb = (tb // 2) // sub * sub
            else:
                break
    return tb, tc


def positional_encode(x: jnp.ndarray, pos_encode_full: jnp.ndarray,
                      *, min_pallas_bytes: int = 1 << 20) -> jnp.ndarray:
    """x: (B, S, D). Returns x + pos_encode_full[:S, :] broadcast over batch."""
    B, S, D = x.shape
    SD = S * D
    out_dtype = jnp.promote_types(x.dtype, pos_encode_full.dtype)
    pe_slice = pos_encode_full[:S, :]

    # Tiny tensors: a standalone pallas_call is pure fixed cost (launch + DMA
    # setup) — let XLA fuse the elementwise add instead.
    total_bytes = B * SD * jnp.dtype(out_dtype).itemsize
    if total_bytes < min_pallas_bytes:
        return (x + pe_slice[None, :, :]).astype(out_dtype)

    # Lane-dense 2-D views (row-major reshapes are free).
    x2 = x.reshape(B, SD)
    pe2 = pe_slice.reshape(1, SD)   # kept f32: the add runs in the promoted dtype

    itemsize = jnp.dtype(out_dtype).itemsize
    sub = _sublane_multiple(x.dtype, out_dtype)
    tb, tc = _pick_tiles(B, SD, itemsize, sub)

    # Grid order: S*D tiles outer, batch tiles inner.  pe's block index only
    # depends on the outer axis, so its DMA is skipped across consecutive
    # inner (batch) steps instead of being re-fetched once per batch tile.
    grid = (_cdiv(SD, tc), _cdiv(B, tb))

    # NOTE: in production pass input_output_aliases={0: 0} when x is donated
    # and out_dtype == x.dtype, to avoid allocating a second (B, S, D) buffer.
    out2 = pl.pallas_call(
        _pos_encode_kernel,
        out_shape=jax.ShapeDtypeStruct((B, SD), out_dtype),
        grid=grid,
        in_specs=[
            pl.BlockSpec((tb, tc), lambda j, i: (i, j)),  # x tile
            pl.BlockSpec((1, tc), lambda j, i: (0, j)),   # pe tile (batch-invariant)
        ],
        out_specs=pl.BlockSpec((tb, tc), lambda j, i: (i, j)),
        compiler_params=pltpu.CompilerParams(
            dimension_semantics=("parallel", "parallel"),
            vmem_limit_bytes=32 << 20,  # explicit: v5e's scoped default is only 16 MiB
        ),
    )(x2, pe2)

    return out2.reshape(B, S, D)


if __name__ == "__main__":
    d_model = 32
    max_seq_len = 512

    # Deterministic "parameter" setup (module __init__ equivalent).
    pos_encode_full = _get_pos_encode(max_seq_len, d_model)            # (512, 32)

    key = jax.random.PRNGKey(0)
    k1, k2, k3 = jax.random.split(key, 3)

    # 1) Module-sized demo shape, forced through the Pallas kernel.
    batch, seq = 2, 8
    x_small = jax.random.normal(k1, (batch, seq, d_model), dtype=jnp.float32)
    out_small = jax.block_until_ready(
        positional_encode(x_small, pos_encode_full, min_pallas_bytes=0))
    ref_small = x_small + pos_encode_full[:seq, :][None, :, :]
    assert out_small.shape == (batch, seq, d_model)
    assert out_small.dtype == ref_small.dtype
    assert jnp.allclose(out_small, ref_small, atol=1e-6), "small f32 mismatch"

    # 2) Larger f32 shape: exercises multi-block tiling (batch-tiled, 2 MiB blocks).
    x_big = jax.random.normal(k2, (128, max_seq_len, d_model), dtype=jnp.float32)
    out_big = jax.block_until_ready(positional_encode(x_big, pos_encode_full))
    ref_big = x_big + pos_encode_full[None, :, :]
    assert jnp.allclose(out_big, ref_big, atol=1e-6), "large f32 mismatch"

    # 3) bf16 input: exercises the dtype-aware sublane tile and the promoted
    #    (bf16 x + f32 pe -> f32 out) path.
    x_bf16 = jax.random.normal(k3, (64, max_seq_len, d_model), dtype=jnp.bfloat16)
    out_bf16 = jax.block_until_ready(positional_encode(x_bf16, pos_encode_full))
    ref_bf16 = x_bf16 + pos_encode_full[None, :, :]
    assert out_bf16.dtype == jnp.float32
    assert jnp.allclose(out_bf16, ref_bf16, atol=1e-5), "bf16 mismatch"

    print("KERNEL_OK")
</pallas_src>

<mosaic_0001>
module attributes {stable_mosaic.version = 11 : i64} {
  func.func @_pos_encode_kernel(%arg0: i32, %arg1: i32, %arg2: memref<2x256xf32, #tpu.memory_space<vmem>>, %arg3: memref<1x256xf32, #tpu.memory_space<vmem>>, %arg4: memref<2x256xf32, #tpu.memory_space<vmem>>) attributes {dimension_semantics = [#tpu.dimension_semantics<parallel>, #tpu.dimension_semantics<parallel>], iteration_bounds = array<i64: 1, 1>, scalar_prefetch = 0 : i64, scratch_operands = 0 : i64, tpu.core_type = #tpu.core_type<tc>, window_params = [{transform_indices = @transform_0, window_bounds = array<i64: 2, 256>}, {transform_indices = @transform_1, window_bounds = array<i64: 1, 256>}, {transform_indices = @transform_2, window_bounds = array<i64: 2, 256>}]} {
    %c0 = arith.constant 0 : index
    %c0_0 = arith.constant 0 : index
    %0 = vector.load %arg2[%c0, %c0_0] : memref<2x256xf32, #tpu.memory_space<vmem>>, vector<2x256xf32>
    %c0_1 = arith.constant 0 : index
    %c0_2 = arith.constant 0 : index
    %1 = vector.load %arg3[%c0_1, %c0_2] : memref<1x256xf32, #tpu.memory_space<vmem>>, vector<1x256xf32>
    %2 = vector.broadcast %1 : vector<1x256xf32> to vector<2x256xf32>
    %3 = arith.addf %0, %2 : vector<2x256xf32>
    %c0_3 = arith.constant 0 : index
    %c0_4 = arith.constant 0 : index
    %4 = vector.load %arg4[%c0_3, %c0_4] : memref<2x256xf32, #tpu.memory_space<vmem>>, vector<2x256xf32>
    tpu.vector_store %arg4[%c0_3, %c0_4], %3 {strides = array<i32>} : memref<2x256xf32, #tpu.memory_space<vmem>>, vector<2x256xf32>,
    return
  }
  func.func @transform_0(%arg0: i32, %arg1: i32) -> (i32, i32) {
    %c0_i32 = arith.constant 0 : i32
    return %arg1, %arg0 : i32, i32
  }
  func.func @transform_1(%arg0: i32, %arg1: i32) -> (i32, i32) {
    %c0_i32 = arith.constant 0 : i32
    %c0_i32_0 = arith.constant 0 : i32
    return %c0_i32, %arg0 : i32, i32
  }
  func.func @transform_2(%arg0: i32, %arg1: i32) -> (i32, i32) {
    %c0_i32 = arith.constant 0 : i32
    return %arg1, %arg0 : i32, i32
  }
}

</mosaic_0001>

<bundles_post_ra>
// kernel: tpu_custom_call.1
= control target key start
LH: loop header
LB: loop body
LE: loop exit
PB: predicated region body
PF: predicated region fallthrough
CT: control target
= control target key end

     0   :  { %7 = vsyncpa [#allocation3], 0  ;;  %s157_s0 = inlined_call_operand.hbm [shape: f32[2,256], index: 0, kind: input, shape index: {}]   ;;  %s158_s1 = inlined_call_operand.vmem [shape: f32[1,256], index: 1, kind: input, shape index: {}]   ;;  %s159_s2 = inlined_call_operand.hbm [shape: f32[2,256], index: 2, kind: output, shape index: {}]  }
   0x1   :  { %8 = vsyncpa [#allocation4], 0  ;;  %s112_s9 = smov [#allocation2]   ;;  %s64_s13 = scalar_lea.hbm %s157_s0, 64 }
   0x2   :  { %s15_s10 = sshll.u32 %s112_s9, 4  ;;  %p65_p0 = scmp.ne.s32.totalorder %s157_s0, %s64_s13  ;;  %s16_s10 = int_to_ptr.vmem [resolvable:$true] %s15_s10 }
   0x3   :  { %p68_p1 = scmp.lt.u32.totalorder %s64_s13, %s157_s0 }
   0x5   :  { %p70_p2 = pnand %p68_p1, %p65_p0 }
   0x7   :  { %73 = shalt.err (!%p70_p2)
}
   0x8   :  { %s74_s18 = scalar_lea.vmem %s16_s10, 64  ;;  %p79_p4 = scmp.lt.s32.totalorder %s16_s10, %s16_s10 }
   0x9   :  { %p75_p3 = scmp.ne.s32.totalorder %s16_s10, %s74_s18  ;;  %p80_p5 = scmp.lt.s32.totalorder %s74_s18, %s74_s18 }
   0xb   :  { %p81_p6 = por %p80_p5, %p79_p4 }
   0xd   :  { %p82_p7 = pnand %p81_p6, %p75_p3 }
   0xf   :  { %85 = shalt.err (!%p82_p7)
}
  0x10   :  { %18 = dma.hbm_to_vmem [thread:$0]  %s157_s0, 64, %s16_s10, [#allocation3]  }
  0x11   :  { %108 = dma.done.wait [#allocation3], 64  }
  0x12   :  { %109 = vsyncadd [#allocation3], 4294967232  ;;  %v27_v0 = vlaneseq  ;;  %v113_v1 = vmov 1983009808   ;;  %v25_v7 = vld [vmem:[%s158_s1] sm:$0x3] }
  0x13   :  { %v37_v2 = vunpack.c.l.s4 %v113_v1  ;;  %v24_v12 = vld [vmem:[#allocation2] sm:$0xf]  ;;  %s114_s23 = smov [#allocation5]  }
  0x14   :  { %v28_v3 = vshrl.u32 %v27_v0, 7  ;;  %s52_s0 = sshll.u32 %s114_s23, 4  ;;  %s53_s0 = int_to_ptr.vmem [resolvable:$true] %s52_s0 }
  0x15   :  { %v38_v6 = vunpack.c.0.s8 %v37_v2  ;;  %s86_s24 = scalar_lea.vmem %s53_s0, 64  ;;  %p91_p9 = scmp.lt.s32.totalorder %s53_s0, %s53_s0 }
  0x16   :  { %v29_v4 = vsub.s32 0, %v28_v3  ;;  %v33_v5 = vsub.s32 1, %v28_v3  ;;  %p87_p8 = scmp.ne.s32.totalorder %s53_s0, %s86_s24  ;;  %p92_p10 = scmp.lt.s32.totalorder %s86_s24, %s86_s24 }
  0x17   :  { %v41_v10 = vsub.s32 %v38_v6, %v28_v3 }
  0x18   :  { %v30_v8 = vrot.slane %v25_v7, %v29_v4  ;;  %v34_v9 = vrot.slane %v25_v7, %v33_v5  ;;  %p93_p11 = por %p92_p10, %p91_p9 }
  0x1a   :  { %v35_v11 = vcombine.low %v30_v8, %v34_v9  ;;  %p94_p12 = pnand %p93_p11, %p87_p8 }
  0x1c   :  { %v42_v13 = vrot.slane %v35_v11, %v41_v10 }
  0x1e   :  { %v44_v14 = vadd.f32 %v42_v13, %v24_v12 }
  0x20   :  { %45 = vst [vmem:[#allocation5] sm:$0xf] %v44_v14 }
  0x21   :  { %97 = shalt.err (!%p94_p12)
}
  0x22   :  { %s98_s26 = scalar_lea.hbm %s159_s2, 64 }
  0x23   :  { %p99_p13 = scmp.ne.s32.totalorder %s159_s2, %s98_s26  ;;  %p102_p0 = scmp.lt.u32.totalorder %s98_s26, %s159_s2 }
  0x25   :  { %p104_p1 = pnand %p102_p0, %p99_p13 }
  0x27   :  { %107 = shalt.err (!%p104_p1)
}
  0x28   :  { %55 = dma.vmem_to_hbm [thread:$0]  %s53_s0, 64, %s159_s2, [#allocation4]  }
  0x29   :  { %110 = dma.done.wait [#allocation4], 64  }
  0x2a   :  { %111 = vsyncadd [#allocation4], 4294967232 }
  0x2b   :  { %59 = vsyncpa [#allocation3], 1 }
  0x2c   :  { %60 = vsyncpa [#allocation4], 1 }

</bundles_post_ra>
